<compile_context>
chip_gen: v7x
topology: tpu7x:2x2x1
jax: 0.10.0
libtpu: 0.0.40
codegen_flags: <defaults>
</compile_context>

<pallas_src>
import functools

import jax
import jax.numpy as jnp
from jax.experimental import pallas as pl
from jax.experimental.pallas import tpu as pltpu


# ----------------------------------------------------------------------------
# helpers
# ----------------------------------------------------------------------------
def _round_up(x, m):
    return (x + m - 1) // m * m


def _choose_row_tile(rows, row_tile=None, max_tile=512):
    """Pick a row tile (multiple of 8, <= max_tile) and the padded row count."""
    rows8 = _round_up(rows, 8)
    if row_tile is None:
        row_tile = min(rows8, max_tile)
    row_tile = min(_round_up(row_tile, 8), rows8)
    rows_padded = _round_up(rows8, row_tile)
    return row_tile, rows_padded


_VMEM_LIMIT = 32 * 1024 * 1024  # 32 MiB: <= default scoped on v6e/v7x, raises v5e's 16


# ----------------------------------------------------------------------------
# Fused PreNorm + Linear kernel:   out = (LN(x)) @ W + b
# ----------------------------------------------------------------------------
def _prenorm_linear_kernel(x_ref, lnw_ref, lnb_ref, w_ref, b_ref, o_ref,
                           *, eps, use_var):
    # x_ref: (TR, K); lnw/lnb: (1, K); w_ref: (K, N); b_ref: (1, N); o_ref: (TR, N)
    x = x_ref[...].astype(jnp.float32)
    u = jnp.mean(x, axis=-1, keepdims=True)
    xc = x - u
    if use_var:
        s = jnp.mean(xc * xc, axis=-1, keepdims=True)  # biased variance (.mean())
        xc = xc * jax.lax.rsqrt(s + eps)
    normed = lnw_ref[...] * xc + lnb_ref[...]
    # Cast activations to the weight dtype -> bf16 MXU path if weights are bf16,
    # f32 accumulation either way.
    acc = jnp.dot(normed.astype(w_ref.dtype), w_ref[...],
                  preferred_element_type=jnp.float32)
    o_ref[...] = (acc + b_ref[...].astype(jnp.float32)).astype(o_ref.dtype)


def prenorm_linear_pallas(x, ln_w, ln_b, lin_w, lin_b, *,
                          layer_norm_type, eps=1e-12, row_tile=None):
    """Fused fn(norm(x)) for fn == Linear.  x: (batch, seq, dim)."""
    assert layer_norm_type in ("standard", "no_var")
    batch, seq, dim = x.shape
    dim_out = lin_w.shape[1]
    rows = batch * seq
    x2d = x.reshape(rows, dim)

    tr, rows_padded = _choose_row_tile(rows, row_tile)
    if rows_padded != rows:
        x2d = jnp.pad(x2d, ((0, rows_padded - rows), (0, 0)))

    lnw2 = ln_w.reshape(1, dim).astype(jnp.float32)
    lnb2 = ln_b.reshape(1, dim).astype(jnp.float32)
    b2 = lin_b.reshape(1, dim_out)

    kernel = functools.partial(
        _prenorm_linear_kernel, eps=eps, use_var=(layer_norm_type == "standard"))

    grid = (rows_padded // tr,)
    cost = pl.CostEstimate(
        flops=2 * rows_padded * dim * dim_out + 6 * rows_padded * dim,
        transcendentals=rows_padded if layer_norm_type == "standard" else 0,
        bytes_accessed=4 * (rows_padded * dim + dim * dim_out
                            + rows_padded * dim_out + 2 * dim + dim_out),
    )

    out = pl.pallas_call(
        kernel,
        out_shape=jax.ShapeDtypeStruct((rows_padded, dim_out), x.dtype),
        grid_spec=pltpu.PrefetchScalarGridSpec(
            num_scalar_prefetch=0,
            grid=grid,
            in_specs=[
                pl.BlockSpec((tr, dim), lambda i: (i, 0)),        # activations (tiled)
                pl.BlockSpec((1, dim), lambda i: (0, 0)),         # LN weight (resident)
                pl.BlockSpec((1, dim), lambda i: (0, 0)),         # LN bias (resident)
                pl.BlockSpec((dim, dim_out), lambda i: (0, 0)),   # Linear W (resident)
                pl.BlockSpec((1, dim_out), lambda i: (0, 0)),     # Linear b (resident)
            ],
            out_specs=pl.BlockSpec((tr, dim_out), lambda i: (i, 0)),
        ),
        compiler_params=pltpu.CompilerParams(
            dimension_semantics=("parallel",),       # shards rows across v7x's 2 TCs
            vmem_limit_bytes=_VMEM_LIMIT,
        ),
        cost_estimate=cost,
    )(x2d, lnw2, lnb2, lin_w, b2)

    return out[:rows].reshape(batch, seq, dim_out)


# ----------------------------------------------------------------------------
# Tiled LayerNorm-only kernel (for arbitrary `fn` that is not a Linear)
# ----------------------------------------------------------------------------
def _layernorm_kernel(x_ref, w_ref, b_ref, o_ref, *, eps, use_var):
    x = x_ref[...].astype(jnp.float32)
    u = jnp.mean(x, axis=-1, keepdims=True)
    xc = x - u
    if use_var:
        s = jnp.mean(xc * xc, axis=-1, keepdims=True)
        xc = xc * jax.lax.rsqrt(s + eps)
    o_ref[...] = (w_ref[...] * xc + b_ref[...]).astype(o_ref.dtype)


def layernorm_pallas(x2d, weight, bias, *, eps=1e-12,
                     layer_norm_type="standard", row_tile=None):
    """x2d: (rows, dim). Returns LN(x2d) with the same shape/dtype."""
    assert layer_norm_type in ("standard", "no_var")
    rows, dim = x2d.shape
    tr, rows_padded = _choose_row_tile(rows, row_tile)
    xp = x2d
    if rows_padded != rows:
        xp = jnp.pad(x2d, ((0, rows_padded - rows), (0, 0)))

    w2 = weight.reshape(1, dim).astype(jnp.float32)
    b2 = bias.reshape(1, dim).astype(jnp.float32)
    kernel = functools.partial(
        _layernorm_kernel, eps=eps, use_var=(layer_norm_type == "standard"))

    out = pl.pallas_call(
        kernel,
        out_shape=jax.ShapeDtypeStruct((rows_padded, dim), x2d.dtype),
        grid_spec=pltpu.PrefetchScalarGridSpec(
            num_scalar_prefetch=0,
            grid=(rows_padded // tr,),
            in_specs=[
                pl.BlockSpec((tr, dim), lambda i: (i, 0)),
                pl.BlockSpec((1, dim), lambda i: (0, 0)),
                pl.BlockSpec((1, dim), lambda i: (0, 0)),
            ],
            out_specs=pl.BlockSpec((tr, dim), lambda i: (i, 0)),
        ),
        compiler_params=pltpu.CompilerParams(
            dimension_semantics=("parallel",),
            vmem_limit_bytes=_VMEM_LIMIT,
        ),
    )(xp, w2, b2)
    return out[:rows]


def prenorm_apply(x, ln_weight, ln_bias, fn, *, layer_norm_type, eps=1e-12):
    """General PreNorm: fn(norm(x)) for an arbitrary callable fn on (rows, dim)."""
    batch, seq, dim = x.shape
    x2d = x.reshape(batch * seq, dim)
    normed = layernorm_pallas(
        x2d, ln_weight, ln_bias, eps=eps, layer_norm_type=layer_norm_type)
    y2d = fn(normed)
    return y2d.reshape(batch, seq, -1)


# ----------------------------------------------------------------------------
# Pure-JAX references
# ----------------------------------------------------------------------------
def _ln_ref(x, ln_w, ln_b, *, layer_norm_type, eps=1e-12):
    u = jnp.mean(x, axis=-1, keepdims=True)
    xc = x - u
    if layer_norm_type == "standard":
        s = jnp.mean(xc * xc, axis=-1, keepdims=True)
        xc = xc / jnp.sqrt(s + eps)
    return ln_w * xc + ln_b


def _prenorm_linear_ref(x, ln_w, ln_b, lin_w, lin_b, *, layer_norm_type, eps=1e-12):
    return _ln_ref(x, ln_w, ln_b, layer_norm_type=layer_norm_type, eps=eps) @ lin_w + lin_b


if __name__ == "__main__":
    # Small but lane-dense shapes (last dim = 128 lanes); rows = 128, row_tile=64
    # so the grid actually has 2 parallel steps.
    batch, seq, dim = 2, 64, 128
    dim_out = dim

    key = jax.random.PRNGKey(0)
    kx, kw, kb = jax.random.split(key, 3)

    x = jax.random.normal(kx, (batch, seq, dim), dtype=jnp.float32)

    # LayerNorm params exactly as in __init__: ones / zeros.
    ln_weight = jnp.ones((dim,), dtype=jnp.float32)
    ln_bias = jnp.zeros((dim,), dtype=jnp.float32)

    # Deterministic params for the wrapped `fn` (a Linear dim -> dim_out).
    lin_w = jax.random.normal(kw, (dim, dim_out), dtype=jnp.float32) * 0.02
    lin_b = jax.random.normal(kb, (dim_out,), dtype=jnp.float32) * 0.02

    for ln_type in ("standard", "no_var"):
        # Fused PreNorm + Linear (the fast path).
        out = prenorm_linear_pallas(
            x, ln_weight, ln_bias, lin_w, lin_b,
            layer_norm_type=ln_type, row_tile=64)
        out = jax.block_until_ready(out)
        ref = _prenorm_linear_ref(
            x, ln_weight, ln_bias, lin_w, lin_b, layer_norm_type=ln_type)
        assert out.shape == (batch, seq, dim_out)
        assert jnp.allclose(out, ref, atol=1e-4, rtol=1e-4), (
            f"fused mismatch for layer_norm_type={ln_type}")

        # Standalone tiled LayerNorm kernel (general-fn path).
        ln_out = layernorm_pallas(
            x.reshape(batch * seq, dim), ln_weight, ln_bias,
            layer_norm_type=ln_type, row_tile=64)
        ln_out = jax.block_until_ready(ln_out)
        ln_ref = _ln_ref(
            x, ln_weight, ln_bias, layer_norm_type=ln_type
        ).reshape(batch * seq, dim)
        assert jnp.allclose(ln_out, ln_ref, atol=1e-5, rtol=1e-5), (
            f"LN mismatch for layer_norm_type={ln_type}")

    # General PreNorm wrapper with a non-Linear fn (elementwise GELU).
    out2 = prenorm_apply(
        x, ln_weight, ln_bias, jax.nn.gelu, layer_norm_type="standard")
    out2 = jax.block_until_ready(out2)
    ref2 = jax.nn.gelu(_ln_ref(x, ln_weight, ln_bias, layer_norm_type="standard"))
    assert jnp.allclose(out2, ref2, atol=1e-5, rtol=1e-5), "general-fn path mismatch"

    print("KERNEL_OK")
</pallas_src>

<mosaic_0001>
module attributes {stable_mosaic.version = 11 : i64} {
  func.func @_prenorm_linear_kernel(%arg0: i32, %arg1: memref<64x128xf32, #tpu.memory_space<vmem>>, %arg2: memref<1x128xf32, #tpu.memory_space<vmem>>, %arg3: memref<1x128xf32, #tpu.memory_space<vmem>>, %arg4: memref<128x128xf32, #tpu.memory_space<vmem>>, %arg5: memref<1x128xf32, #tpu.memory_space<vmem>>, %arg6: memref<64x128xf32, #tpu.memory_space<vmem>>) attributes {dimension_semantics = [#tpu.dimension_semantics<parallel>], iteration_bounds = array<i64: 2>, scalar_prefetch = 0 : i64, scratch_operands = 0 : i64, tpu.core_type = #tpu.core_type<tc>, window_params = [{transform_indices = @transform_0, window_bounds = array<i64: 64, 128>}, {pipeline_mode = #tpu.pipeline_mode<synchronous>, transform_indices = @transform_1, window_bounds = array<i64: 1, 128>}, {pipeline_mode = #tpu.pipeline_mode<synchronous>, transform_indices = @transform_2, window_bounds = array<i64: 1, 128>}, {pipeline_mode = #tpu.pipeline_mode<synchronous>, transform_indices = @transform_3, window_bounds = array<i64: 128, 128>}, {pipeline_mode = #tpu.pipeline_mode<synchronous>, transform_indices = @transform_4, window_bounds = array<i64: 1, 128>}, {transform_indices = @transform_5, window_bounds = array<i64: 64, 128>}]} {
    %c0 = arith.constant 0 : index
    %c0_0 = arith.constant 0 : index
    %0 = vector.load %arg1[%c0, %c0_0] : memref<64x128xf32, #tpu.memory_space<vmem>>, vector<64x128xf32>
    %cst = arith.constant dense<0.000000e+00> : vector<64xf32>
    %1 = vector.multi_reduction <add>, %0, %cst [1] : vector<64x128xf32> to vector<64xf32>
    %2 = vector.shape_cast %1 : vector<64xf32> to vector<64x1xf32>
    %cst_1 = arith.constant 1.280000e+02 : f32
    %3 = vector.broadcast %cst_1 : f32 to vector<64x1xf32>
    %4 = arith.divf %2, %3 : vector<64x1xf32>
    %5 = vector.broadcast %4 : vector<64x1xf32> to vector<64x128xf32>
    %6 = arith.subf %0, %5 : vector<64x128xf32>
    %7 = arith.mulf %6, %6 : vector<64x128xf32>
    %cst_2 = arith.constant dense<0.000000e+00> : vector<64xf32>
    %8 = vector.multi_reduction <add>, %7, %cst_2 [1] : vector<64x128xf32> to vector<64xf32>
    %9 = vector.shape_cast %8 : vector<64xf32> to vector<64x1xf32>
    %cst_3 = arith.constant 1.280000e+02 : f32
    %10 = vector.broadcast %cst_3 : f32 to vector<64x1xf32>
    %11 = arith.divf %9, %10 : vector<64x1xf32>
    %cst_4 = arith.constant 9.99999996E-13 : f32
    %12 = vector.broadcast %cst_4 : f32 to vector<64x1xf32>
    %13 = arith.addf %11, %12 : vector<64x1xf32>
    %14 = math.rsqrt %13 : vector<64x1xf32>
    %15 = vector.broadcast %14 : vector<64x1xf32> to vector<64x128xf32>
    %16 = arith.mulf %6, %15 : vector<64x128xf32>
    %c0_5 = arith.constant 0 : index
    %c0_6 = arith.constant 0 : index
    %17 = vector.load %arg2[%c0_5, %c0_6] : memref<1x128xf32, #tpu.memory_space<vmem>>, vector<1x128xf32>
    %18 = vector.broadcast %17 : vector<1x128xf32> to vector<64x128xf32>
    %19 = arith.mulf %18, %16 : vector<64x128xf32>
    %c0_7 = arith.constant 0 : index
    %c0_8 = arith.constant 0 : index
    %20 = vector.load %arg3[%c0_7, %c0_8] : memref<1x128xf32, #tpu.memory_space<vmem>>, vector<1x128xf32>
    %21 = vector.broadcast %20 : vector<1x128xf32> to vector<64x128xf32>
    %22 = arith.addf %19, %21 : vector<64x128xf32>
    %c0_9 = arith.constant 0 : index
    %c0_10 = arith.constant 0 : index
    %23 = vector.load %arg4[%c0_9, %c0_10] : memref<128x128xf32, #tpu.memory_space<vmem>>, vector<128x128xf32>
    %cst_11 = arith.constant dense<0.000000e+00> : vector<64x128xf32>
    %24 = tpu.matmul %22, %23, %cst_11 {dimension_numbers = #tpu.dot_dimension_numbers<[1], [0], [0], [1], [0, 0, 1, 1], [], []>} : vector<64x128xf32>, vector<128x128xf32>, vector<64x128xf32> -> vector<64x128xf32>
    %c0_12 = arith.constant 0 : index
    %c0_13 = arith.constant 0 : index
    %25 = vector.load %arg5[%c0_12, %c0_13] : memref<1x128xf32, #tpu.memory_space<vmem>>, vector<1x128xf32>
    %26 = vector.broadcast %25 : vector<1x128xf32> to vector<64x128xf32>
    %27 = arith.addf %24, %26 : vector<64x128xf32>
    %c0_14 = arith.constant 0 : index
    %c0_15 = arith.constant 0 : index
    %28 = vector.load %arg6[%c0_14, %c0_15] : memref<64x128xf32, #tpu.memory_space<vmem>>, vector<64x128xf32>
    tpu.vector_store %arg6[%c0_14, %c0_15], %27 {strides = array<i32>} : memref<64x128xf32, #tpu.memory_space<vmem>>, vector<64x128xf32>,
    return
  }
  func.func @transform_0(%arg0: i32) -> (i32, i32) {
    %c0_i32 = arith.constant 0 : i32
    %c0_i32_0 = arith.constant 0 : i32
    return %arg0, %c0_i32 : i32, i32
  }
  func.func @transform_1(%arg0: i32) -> (i32, i32) {
    %c0_i32 = arith.constant 0 : i32
    %c0_i32_0 = arith.constant 0 : i32
    %c0_i32_1 = arith.constant 0 : i32
    return %c0_i32, %c0_i32_0 : i32, i32
  }
  func.func @transform_2(%arg0: i32) -> (i32, i32) {
    %c0_i32 = arith.constant 0 : i32
    %c0_i32_0 = arith.constant 0 : i32
    %c0_i32_1 = arith.constant 0 : i32
    return %c0_i32, %c0_i32_0 : i32, i32
  }
  func.func @transform_3(%arg0: i32) -> (i32, i32) {
    %c0_i32 = arith.constant 0 : i32
    %c0_i32_0 = arith.constant 0 : i32
    %c0_i32_1 = arith.constant 0 : i32
    return %c0_i32, %c0_i32_0 : i32, i32
  }
  func.func @transform_4(%arg0: i32) -> (i32, i32) {
    %c0_i32 = arith.constant 0 : i32
    %c0_i32_0 = arith.constant 0 : i32
    %c0_i32_1 = arith.constant 0 : i32
    return %c0_i32, %c0_i32_0 : i32, i32
  }
  func.func @transform_5(%arg0: i32) -> (i32, i32) {
    %c0_i32 = arith.constant 0 : i32
    %c0_i32_0 = arith.constant 0 : i32
    return %arg0, %c0_i32 : i32, i32
  }
}

</mosaic_0001>

<bundles_post_ra>
// kernel: tpu_custom_call.1
= control target key start
LH: loop header
LB: loop body
LE: loop exit
PB: predicated region body
PF: predicated region fallthrough
CT: control target
= control target key end

     0   :  { %10 = vsyncpa [#allocation3], 0  ;;  %s1261_s0 = inlined_call_operand.hbm [shape: f32[128,128], index: 0, kind: input, shape index: {}]   ;;  %s1262_s1 = inlined_call_operand.vmem [shape: f32[1,128], index: 1, kind: input, shape index: {}]   ;;  %s1263_s2 = inlined_call_operand.vmem [shape: f32[1,128], index: 2, kind: input, shape index: {}]   ;;  %s1264_s3 = inlined_call_operand.hbm [shape: f32[128,128], index: 3, kind: input, shape index: {}]   ;;  %s1265_s4 = inlined_call_operand.vmem [shape: f32[1,128], index: 4, kind: input, shape index: {}]   ;;  %s1266_s5 = inlined_call_operand.hbm [shape: f32[128,128], index: 5, kind: output, shape index: {}]  }
   0x1   :  { %12 = vsyncpa [#allocation3 + $0x1], 0 }
   0x2   :  { %13 = vsyncpa [#allocation6], 0 }
   0x3   :  { %14 = vsyncpa [#allocation4], 0 }
   0x4   :  { %16 = vsyncpa [#allocation4 + $0x1], 0  ;;  %s1001_s18 = smov 0   ;;  %s1003_s19 = smov 0  }
   0x5   :  { %s1005_s20 = smov 0   ;;  %s1007_s21 = smov 0  }
   0x6 LB: > { %s1022_s22 = sadd.s32 4294967295, %s962_s21   ;;  %s620_s23 = sadd.s32 4294967294, %s962_s21   ;;  %s962_s21 = sphi %s1007_s21, %s1286_s21   ;;  %s958_s20 = sphi %s1005_s20, %s1285_s20   ;;  %s954_s19 = sphi %s1003_s19, %s1284_s19   ;;  %s950_s18 = sphi %s1001_s18, %s1283_s18  }
   0x7   : > { %p42_p0 = scmp.ne.s32.totalorder %s954_s19, %s950_s18  ;;  %p1267_p1 = scmp.eq.s32.totalorder %s1022_s22, 0 }
   0x8   : > { %p156_p3 = scmp.eq.s32.totalorder %s620_s23, 1  ;;  %p621_p5 = scmp.ge.s32.totalorder %s962_s21, 1 }
   0x9   : > { %p1031_p4 = por %p1267_p1, %p42_p0  ;;  %p163_p7 = scmp.lt.s32.totalorder %s962_s21, 3 }
   0xa   : > { %p1036_p6 = por %p156_p3, %p42_p0  ;;  %s964_s27 = smov [#allocation5]  }
   0xb   : > { %s1270_s24 = scalar_select %p1031_p4, 1, 0 }
   0xc   : > { %s1271_s25 = scalar_select %p1036_p6, 1, 0 }
   0xd   : > { %p1041_p8 = pnand %p621_p5, %p163_p7  ;;  %s181_s28 = sshll.u32 %s964_s27, 4  ;;  %s1045_s28 = int_to_ptr.vmem [resolvable:$true] %s181_s28 }
   0xe   : > { %s1057_s30 = sadd.s32 1, %s962_s21   ;;  %s29_s6 = sadd.s32 1, %s958_s20 }
   0xf   : > { %s1272_s26 = scalar_select %p1041_p8, 1, 0 }
  0x10   : > { %p765_p9 = pneg %p1041_p8  ;;  %s26_s7 = ssub.s32 %s962_s21, %s1057_s30 }
  0x11   : > { %s834_s10 = scalar_lea.hbm %s1264_s3, 2048 }
  0x12   : > { %p1052_p11 = pnand %p765_p9, %p1267_p1  ;;  %p835_p12 = scmp.ne.s32.totalorder %s1264_s3, %s834_s10 }
  0x13   : > { %p841_p5 = scmp.lt.u32.totalorder %s834_s10, %s1264_s3 }
  0x14   : > { %p836_p13 = pneg %p1052_p11 }
  0x16   : > { %p837_p0 = pnand %p836_p13, %p835_p12 }
  0x18   : > { %p838_p3 = pneg %p837_p0 }
  0x1a   : > { %p843_p7 = pnand %p841_p5, %p838_p3 }
  0x1c   : > { %846 = shalt.err (!%p843_p7)
}
  0x1d   : > { %s847_s15 = scalar_lea.vmem %s1045_s28, 2048  ;;  %p855_p2 = scmp.lt.s32.totalorder %s1045_s28, %s1045_s28 }
  0x1e   : > { %p848_p9 = scmp.ne.s32.totalorder %s1045_s28, %s847_s15  ;;  %p856_p6 = scmp.lt.s32.totalorder %s847_s15, %s847_s15 }
  0x20   : > { %p850_p10 = pnand %p848_p9, %p836_p13  ;;  %p857_p4 = por %p856_p6, %p855_p2 }
  0x22   : > { %p851_p1 = pneg %p850_p10 }
  0x24   : > { %p858_p8 = pnand %p857_p4, %p851_p1 }
  0x26   : > { %861 = shalt.err (!%p858_p8)
}
  0x27   : > { %s965_s16 = smov 128   ;;  %s966_s17 = smov 8  }
  0x28   : > { %768 = dma.hbm_to_vmem [thread:$0]  (!%p1052_p11), %s1264_s3, 2048, %s1045_s28, [#allocation6], %s965_s16, %s965_s16, %s966_s17  }
  0x29   : > { %p27_p1 = scmp.eq.s32.totalorder %s26_s7, 0  ;;  %p36_p2 = scmp.ne.s32.totalorder %s958_s20, %s954_s19 }
  0x2a   : > { %p37_p4 = scmp.eq.s32.totalorder %s962_s21, 0  ;;  %p778_p6 = scmp.lt.s32.totalorder %s962_s21, 2 }
  0x2b   : > { %s1091_s8 = scalar_select %p27_p1, %s958_s20, %s29_s6  }
  0x2c   : > { %p38_p8 = por %p37_p4, %p36_p2  ;;  %p1274_p10 = scmp.eq.s32.totalorder %s1022_s22, 1 }
  0x2d   : > { %s198_s29 = sand.u32 1, %s958_s20   ;;  %s639_s10 = sshll.u32 %s962_s21, 10 }
  0x2e   : > { %p1095_p12 = por %p1274_p10, %p36_p2  ;;  %s624_s11 = sshll.u32 %s198_s29, 6 }
  0x2f   : > { %s1104_s14 = scalar_lea.hbm %s1261_s0, %s639_s10  ;;  %s202_s28 = scalar_lea.vmem [#allocation2], %s624_s11 }
  0x30   : > { %s209_s6 = sshll.u32 %s202_s28, 4  ;;  %p1106_p11 = pnand %p778_p6, %p38_p8  ;;  %s1110_s6 = int_to_ptr.vmem [resolvable:$true] %s209_s6 }
  0x31   : > { %s1112_s15 = scalar_lea.sflag [#allocation3], %s198_s29  ;;  %s862_s23 = scalar_lea.hbm %s1104_s14, 1024 }
  0x32   : > { %p863_p13 = scmp.ne.s32.totalorder %s1104_s14, %s862_s23  ;;  %p864_p0 = pneg %p1106_p11 }
  0x33   : > { %s867_s11 = scalar_lea.hbm %s1261_s0, 2048  ;;  %p868_p7 = scmp.lt.u32.totalorder %s1104_s14, %s1261_s0 }
  0x34   : > { %p865_p3 = pnand %p864_p0, %p863_p13  ;;  %p869_p9 = scmp.lt.u32.totalorder %s867_s11, %s862_s23 }
  0x35   : > { %p871_p2 = scmp.lt.u32.totalorder %s862_s23, %s1104_s14 }
  0x36   : > { %p866_p5 = pneg %p865_p3  ;;  %p870_p1 = por %p869_p9, %p868_p7 }
  0x38   : > { %p872_p4 = por %p871_p2, %p870_p1 }
  0x3a   : > { %p873_p6 = pnand %p872_p4, %p866_p5 }
  0x3c   : > { %876 = shalt.err (!%p873_p6)
}
  0x3d   : > { %s877_s29 = scalar_lea.vmem %s1110_s6, 1024  ;;  %s967_s28 = smov [#allocation2]  }
  0x3e   : > { %p878_p8 = scmp.ne.s32.totalorder %s1110_s6, %s877_s29  ;;  %s882_s27 = sshll.u32 %s967_s28, 4  ;;  %s883_s27 = int_to_ptr.vmem [resolvable:$false] %s882_s27 }
  0x3f   : > { %s884_s10 = scalar_lea.vmem %s883_s27, 2048  ;;  %p885_p3 = scmp.lt.s32.totalorder %s1110_s6, %s883_s27 }
  0x40   : > { %p880_p10 = pnand %p878_p8, %p864_p0  ;;  %p886_p7 = scmp.lt.s32.totalorder %s884_s10, %s877_s29 }
  0x42   : > { %p881_p13 = pneg %p880_p10  ;;  %p887_p9 = por %p886_p7, %p885_p3 }
  0x44   : > { %p888_p1 = pnand %p887_p9, %p881_p13 }
  0x46   : > { %891 = shalt.err (!%p888_p1)
}
  0x47   : > { %772 = dma.hbm_to_vmem [thread:$0]  (!%p1106_p11), %s1104_s14, 1024, %s1110_s6, %s1112_s15, %s965_s16, %s965_s16, %s966_s17  }
  0x48   : > { %p1277_p0 = scmp.ne.s32.totalorder %s1272_s26, 0 }
  0x49   : > { %s1146_s23 = sand.u32 (!%p1277_p0), 1, %s954_s19   ;;  %p1278_p5 = scmp.ne.s32.totalorder (!%p1277_p0), %s1270_s24, 0 }
  0x4a   : > { %221 = sbr.rel (%p1277_p0) target bundleno = 643 (0x283), region = 40  ;;  %s628_s11 = sshll.u32 (!%p1277_p0), %s1146_s23, 6 }
  0x4b   : > { %s224_s12 = scalar_lea.sflag (!%p1277_p0), [#allocation3], %s1146_s23  ;;  %s227_s7 = scalar_lea.vmem (!%p1277_p0), [#allocation2], %s628_s11 }
  0x51   : > { %937 = dma.done.wait (%p1278_p5), %s224_s12, 1024  }
  0x52   : > { %939 = vsyncadd (%p1278_p5), %s224_s12, 4294966272  ;;  %p1279_p11 = scmp.eq.s32.totalorder %s1022_s22, 0 }
  0x54   : > { %941 = dma.done.wait (%p1279_p11), [#allocation6], 2048   ;;  %p1280_p2 = pmov %p1279_p11 }
  0x55   : > { %v260_v0 = vld [vmem:[%s227_s7] sm:$0xff]  ;;  %v261_v1 = vld [vmem:[%s227_s7 + $0x8] sm:$0xff]  ;;  %v262_v4 = vld [vmem:[%s227_s7 + $0x10] sm:$0xff]  ;;  %s257_s15 = scalar_lea.vmem [#allocation7], %s628_s11  ;;  %s640_s29 = sshll.u32 %s1022_s22, 10 }
  0x56   : > { %943 = vsyncadd (%p1280_p2), [#allocation6], 4294965248  ;;  %268 = vadd.xlane.f32.xlu0 %v260_v0  ;;  %270 = vadd.xlane.f32.xlu1 %v261_v1  ;;  %v264_v2 = vld [vmem:[%s227_s7 + $0x20] sm:$0xff]  ;;  %v265_v3 = vld [vmem:[%s227_s7 + $0x28] sm:$0xff]  ;;  %s537_s13 = sshll.u32 %s257_s15, 4  ;;  %s1217_s10 = scalar_lea.hbm %s1266_s5, %s640_s29  ;;  %s1212_s13 = int_to_ptr.vmem [resolvable:$true] %s537_s13 }
  0x57   : > { %v266_v5 = vld [vmem:[%s227_s7 + $0x30] sm:$0xff]  ;;  %v263_v6 = vld [vmem:[%s227_s7 + $0x18] sm:$0xff]  ;;  %v387_v8 = vld [vmem:[#allocation5] sm:$0xff]  ;;  %s524_s22 = scalar_lea.sflag [#allocation4], %s1146_s23  ;;  %s892_s11 = scalar_lea.vmem %s1212_s13, 1024 }
  0x58   : > { %v267_v7 = vld [vmem:[%s227_s7 + $0x38] sm:$0xff]  ;;  %v388_v9 = vld [vmem:[#allocation5 + $0x8] sm:$0xff]  ;;  %v389_v10 = vld [vmem:[#allocation5 + $0x10] sm:$0xff]  ;;  %p893_p4 = scmp.ne.s32.totalorder %s1212_s13, %s892_s11  ;;  %s968_s12 = smov [#allocation7]  }
  0x59   : > { %v709_v11 = vpack.c.bf16 %v388_v9, %v387_v8  ;;  %v390_v12 = vld [vmem:[#allocation5 + $0x18] sm:$0xff]  ;;  %v391_v46 = vld [vmem:[#allocation5 + $0x20] sm:$0xff]  ;;  %v392_v47 = vld [vmem:[#allocation5 + $0x28] sm:$0xff]  ;;  %s896_s7 = sshll.u32 %s968_s12, 4  ;;  %s897_s7 = int_to_ptr.vmem [resolvable:$false] %s896_s7 }
  0x5a   : > { %276 = vadd.xlane.f32.xlu0 %v264_v2  ;;  %278 = vadd.xlane.f32.xlu1 %v265_v3  ;;  %v713_v13 = vpack.c.bf16 %v390_v12, %v389_v10  ;;  %v717_v48 = vpack.c.bf16 %v392_v47, %v391_v46  ;;  %v393_v49 = vld [vmem:[#allocation5 + $0x30] sm:$0xff]  ;;  %v394_v50 = vld [vmem:[#allocation5 + $0x38] sm:$0xff]  ;;  %v395_v52 = vld [vmem:[#allocation5 + $0x40] sm:$0xff]  ;;  %p894_p6 = pnand %p893_p4, %p1095_p12  ;;  %s898_s24 = scalar_lea.vmem %s897_s7, 2048 }
  0x5b   : > { %710 = vmatprep.subr.bf16.mxu0 %v709_v11  ;;  %741 = vmatprep.subr.bf16.mxu1 %v709_v11  ;;  %v721_v51 = vpack.c.bf16 %v394_v50, %v393_v49  ;;  %v396_v53 = vld [vmem:[#allocation5 + $0x48] sm:$0xff]  ;;  %v397_v55 = vld [vmem:[#allocation5 + $0x50] sm:$0xff]  ;;  %v398_v56 = vld [vmem:[#allocation5 + $0x58] sm:$0xff]  ;;  %p899_p10 = scmp.lt.s32.totalorder %s1212_s13, %s897_s7  ;;  %p900_p13 = scmp.lt.s32.totalorder %s898_s24, %s892_s11 }
  0x5c   : > { %712 = vmatpush3.bf16.msra.mxu0 %v709_v11  ;;  %749 = vmatpush3.bf16.msra.mxu1 %v709_v11  ;;  %v725_v54 = vpack.c.bf16 %v396_v53, %v395_v52  ;;  %v729_v57 = vpack.c.bf16 %v398_v56, %v397_v55  ;;  %v399_v58 = vld [vmem:[#allocation5 + $0x60] sm:$0xff]  ;;  %v400_v59 = vld [vmem:[#allocation5 + $0x68] sm:$0xff]  ;;  %v401_v61 = vld [vmem:[#allocation5 + $0x70] sm:$0xff]  ;;  %p895_p8 = pneg %p894_p6 }
  0x5d   : > { %714 = vmatprep.subr.bf16.mxu0 %v713_v13  ;;  %742 = vmatprep.subr.bf16.mxu1 %v713_v13  ;;  %v733_v60 = vpack.c.bf16 %v400_v59, %v399_v58  ;;  %v402_v62 = vld [vmem:[#allocation5 + $0x78] sm:$0xff]  ;;  %p901_p3 = por %p900_p13, %p899_p10 }
  0x5e   : > { %272 = vadd.xlane.f32.xlu0 %v262_v4  ;;  %280 = vadd.xlane.f32.xlu1 %v266_v5  ;;  %v737_v63 = vpack.c.bf16 %v402_v62, %v401_v61 }
  0x5f   : > { %p902_p7 = pnand %p901_p3, %p895_p8 }
  0x60   : > { %716 = vmatpush3.bf16.msra.mxu0 %v713_v13  ;;  %750 = vmatpush3.bf16.msra.mxu1 %v713_v13 }
  0x61   : > { %718 = vmatprep.subr.bf16.mxu0 %v717_v48  ;;  %743 = vmatprep.subr.bf16.mxu1 %v717_v48 }
  0x62   : > { %274 = vadd.xlane.f32.xlu0 %v263_v6  ;;  %282 = vadd.xlane.f32.xlu1 %v267_v7 }
  0x64   : > { %720 = vmatpush3.bf16.msra.mxu0 %v717_v48  ;;  %751 = vmatpush3.bf16.msra.mxu1 %v717_v48 }
  0x65   : > { %722 = vmatprep.subr.bf16.mxu0 %v721_v51  ;;  %744 = vmatprep.subr.bf16.mxu1 %v721_v51 }
  0x68   : > { %724 = vmatpush3.bf16.msra.mxu0 %v721_v51  ;;  %752 = vmatpush3.bf16.msra.mxu1 %v721_v51 }
  0x69   : > { %726 = vmatprep.subr.bf16.mxu0 %v725_v54  ;;  %745 = vmatprep.subr.bf16.mxu1 %v725_v54 }
  0x6c   : > { %728 = vmatpush3.bf16.msra.mxu0 %v725_v54  ;;  %753 = vmatpush3.bf16.msra.mxu1 %v725_v54 }
  0x6d   : > { %730 = vmatprep.subr.bf16.mxu0 %v729_v57  ;;  %746 = vmatprep.subr.bf16.mxu1 %v729_v57 }
  0x70   : > { %732 = vmatpush3.bf16.msra.mxu0 %v729_v57  ;;  %754 = vmatpush3.bf16.msra.mxu1 %v729_v57 }
  0x71   : > { %734 = vmatprep.subr.bf16.mxu0 %v733_v60  ;;  %747 = vmatprep.subr.bf16.mxu1 %v733_v60 }
  0x74   : > { %736 = vmatpush3.bf16.msra.mxu0 %v733_v60  ;;  %755 = vmatpush3.bf16.msra.mxu1 %v733_v60 }
  0x75   : > { %738 = vmatprep.subr.bf16.mxu0 %v737_v63  ;;  %748 = vmatprep.subr.bf16.mxu1 %v737_v63 }
  0x78   : > { %740 = vmatpush3.bf16.msra.mxu0 %v737_v63  ;;  %756 = vmatpush3.bf16.msra.mxu1 %v737_v63 }
  0xe3   : > { %v269_v14 = vpop.xlane.xlu0 %268  ;;  %v271_v15 = vpop.xlane.xlu1 %270 }
  0xe4   : > { %v285_v16 = vmul.f32 0.0078125, %v269_v14  ;;  %v286_v17 = vmul.f32 0.0078125, %v271_v15 }
  0xe6   : > { %v1160_v18 = vsub.f32 %v260_v0, %v285_v16  ;;  %v1162_v19 = vsub.f32 %v261_v1, %v286_v17 }
  0xe7   : > { %v277_v20 = vpop.xlane.xlu0 %276  ;;  %v279_v21 = vpop.xlane.xlu1 %278 }
  0xe8   : > { %v289_v22 = vmul.f32 0.0078125, %v277_v20  ;;  %v301_v23 = vmul.f32 %v1160_v18, %v1160_v18  ;;  %v290_v24 = vmul.f32 0.0078125, %v279_v21  ;;  %v302_v27 = vmul.f32 %v1162_v19, %v1162_v19 }
  0xea   : > { %v1166_v25 = vsub.f32 %v264_v2, %v289_v22  ;;  %309 = vadd.xlane.f32.xlu0 %v301_v23  ;;  %v1168_v26 = vsub.f32 %v265_v3, %v290_v24  ;;  %v631_v24 = vld [vmem:[%s1262_s1] ss:$0 sm:$0xff] }
  0xeb   : > { %v273_v28 = vpop.xlane.xlu0 %272  ;;  %v281_v29 = vpop.xlane.xlu1 %280 }
  0xec   : > { %v287_v30 = vmul.f32 0.0078125, %v273_v28  ;;  %v305_v31 = vmul.f32 %v1166_v25, %v1166_v25  ;;  %v291_v32 = vmul.f32 0.0078125, %v281_v29  ;;  %v306_v35 = vmul.f32 %v1168_v26, %v1168_v26 }
  0xee   : > { %v1174_v33 = vsub.f32 %v262_v4, %v287_v30  ;;  %311 = vadd.xlane.f32.xlu0 %v302_v27  ;;  %317 = vadd.xlane.f32.xlu1 %v305_v31  ;;  %v1176_v34 = vsub.f32 %v266_v5, %v291_v32  ;;  %v632_v30 = vld [vmem:[%s1263_s2] ss:$0 sm:$0xff] }
  0xef   : > { %v275_v36 = vpop.xlane.xlu0 %274  ;;  %v283_v37 = vpop.xlane.xlu1 %282 }
  0xf0   : > { %v288_v38 = vmul.f32 0.0078125, %v275_v36  ;;  %v303_v39 = vmul.f32 %v1174_v33, %v1174_v33  ;;  %v292_v40 = vmul.f32 0.0078125, %v283_v37  ;;  %v307_v43 = vmul.f32 %v1176_v34, %v1176_v34 }
  0xf2   : > { %v1182_v41 = vsub.f32 %v263_v6, %v288_v38  ;;  %319 = vadd.xlane.f32.xlu1 %v306_v35  ;;  %313 = vadd.xlane.f32.xlu0 %v303_v39  ;;  %v1184_v42 = vsub.f32 %v267_v7, %v292_v40 }
  0xf4   : > { %v304_v44 = vmul.f32 %v1182_v41, %v1182_v41  ;;  %v308_v45 = vmul.f32 %v1184_v42, %v1184_v42 }
  0xf6   : > { %321 = vadd.xlane.f32.xlu1 %v307_v43  ;;  %315 = vadd.xlane.f32.xlu0 %v304_v44 }
  0xfa   : > { %323 = vadd.xlane.f32.xlu1 %v308_v45 }
 0x177   : > { %v310_v0 = vpop.xlane.xlu0 %309 }
 0x178   : > { %v325_v1 = vmul.f32 0.0078125, %v310_v0 }
 0x17a   : > { %v333_v2 = vadd.f32 1e-12, %v325_v1 }
 0x17b   : > { %v318_v3 = vpop.xlane.xlu1 %317  ;;  %v312_v4 = vpop.xlane.xlu0 %311 }
 0x17c   : > { %818 = vrsqrt.f32 %v333_v2  ;;  %v329_v5 = vmul.f32 0.0078125, %v318_v3  ;;  %v326_v6 = vmul.f32 0.0078125, %v312_v4 }
 0x17e   : > { %v337_v7 = vadd.f32 1e-12, %v329_v5  ;;  %v334_v8 = vadd.f32 1e-12, %v326_v6 }
 0x17f   : > { %v320_v9 = vpop.xlane.xlu1 %319  ;;  %v314_v10 = vpop.xlane.xlu0 %313 }
 0x180   : > { %820 = vrsqrt.f32 %v337_v7  ;;  %v330_v11 = vmul.f32 0.0078125, %v320_v9  ;;  %v327_v12 = vmul.f32 0.0078125, %v314_v10 }
 0x181   : > { %822 = vrsqrt.f32 %v334_v8 }
 0x182   : > { %v338_v13 = vadd.f32 1e-12, %v330_v11  ;;  %v335_v14 = vadd.f32 1e-12, %v327_v12 }
 0x183   : > { %v322_v15 = vpop.xlane.xlu1 %321  ;;  %v316_v16 = vpop.xlane.xlu0 %315 }
 0x184   : > { %824 = vrsqrt.f32 %v338_v13  ;;  %v331_v17 = vmul.f32 0.0078125, %v322_v15  ;;  %v328_v20 = vmul.f32 0.0078125, %v316_v16 }
 0x185   : > { %826 = vrsqrt.f32 %v335_v14 }
 0x186   : > { %v819_v21 = vpop.eup %818  ;;  %v339_v22 = vadd.f32 1e-12, %v331_v17  ;;  %v336_v23 = vadd.f32 1e-12, %v328_v20 }
 0x187   : > { %v324_v27 = vpop.xlane.xlu1 %323  ;;  %v349_v28 = vmul.f32 %v819_v21, %v1160_v18 }
 0x188   : > { %828 = vrsqrt.f32 %v339_v22  ;;  %v332_v29 = vmul.f32 0.0078125, %v324_v27 }
 0x189   : > { %830 = vrsqrt.f32 %v336_v23  ;;  %v364_v31 = vmul.f32 %v631_v24, %v349_v28 }
 0x18a   : > { %v821_v32 = vpop.eup %820  ;;  %v340_v35 = vadd.f32 1e-12, %v332_v29 }
 0x18b   : > { %v823_v36 = vpop.eup %822  ;;  %v379_v37 = vadd.f32 %v632_v30, %v364_v31  ;;  %v353_v38 = vmul.f32 %v821_v32, %v1166_v25 }
 0x18c   : > { %832 = vrsqrt.f32 %v340_v35  ;;  %v350_v39 = vmul.f32 %v823_v36, %v1162_v19 }
 0x18d   : > { %697 = vmatprep.mubr.f32.mxu0 %v379_v37  ;;  %v368_v40 = vmul.f32 %v631_v24, %v353_v38 }
 0x18e   : > { %v825_v18 = vpop.eup %824  ;;  %v365_v43 = vmul.f32 %v631_v24, %v350_v39 }
 0x18f   : > { %v827_v44 = vpop.eup %826  ;;  %v383_v45 = vadd.f32 %v632_v30, %v368_v40  ;;  %v354_v46 = vmul.f32 %v825_v18, %v1168_v26 }
 0x190   : > { %v380_v47 = vadd.f32 %v632_v30, %v365_v43  ;;  %v351_v48 = vmul.f32 %v827_v44, %v1174_v33 }
 0x191   : > { %703 = vmatprep.mubr.f32.mxu1 %v383_v45  ;;  %v369_v49 = vmul.f32 %v631_v24, %v354_v46 }
 0x192   : > { %v829_v50 = vpop.eup %828  ;;  %698 = vmatmul.mubr.f32.vlgmr.msra.gmra.mrb[0].mxu0 %v380_v47  ;;  %v366_v51 = vmul.f32 %v631_v24, %v351_v48 }
 0x193   : > { %v831_v25 = vpop.eup %830  ;;  %v384_v52 = vadd.f32 %v632_v30, %v369_v49  ;;  %v355_v19 = vmul.f32 %v829_v50, %v1176_v34  ;;  %v633_v34 = vld [vmem:[%s1265_s4] ss:$0 sm:$0xff] }
 0x194   : > { %v381_v53 = vadd.f32 %v632_v30, %v366_v51  ;;  %v352_v54 = vmul.f32 %v831_v25, %v1182_v41 }
 0x195   : > { %704 = vmatmul.mubr.f32.vlgmr.msra.gmra.mrb[0].mxu1 %v384_v52  ;;  %v370_v55 = vmul.f32 %v631_v24, %v355_v19 }
 0x196   : > { %v833_v56 = vpop.eup %832  ;;  %700 = vmatprep.mubr.f32.mxu0 %v381_v53  ;;  %v367_v26 = vmul.f32 %v631_v24, %v352_v54 }
 0x197   : > { %v385_v57 = vadd.f32 %v632_v30, %v370_v55  ;;  %v356_v33 = vmul.f32 %v833_v56, %v1184_v42 }
 0x198   : > { %v382_v58 = vadd.f32 %v632_v30, %v367_v26 }
 0x199   : > { %706 = vmatprep.mubr.f32.mxu1 %v385_v57  ;;  %v371_v59 = vmul.f32 %v631_v24, %v356_v33 }
 0x19a   : > { %701 = vmatmul.mubr.f32.gmra.mrb[2].mxu0 %v382_v58 }
 0x19b   : > { %v386_v60 = vadd.f32 %v632_v30, %v371_v59 }
 0x19d   : > { %707 = vmatmul.mubr.f32.gmra.mrb[2].mxu1 %v386_v60 }
 0x265   : > { %v699_v41 = vpop.f32.mrb[0].mxu0 }
 0x266   : > { %v482_v61 = vadd.f32 %v699_v41, %v633_v34  ;;  %v476_v62 = vpop.f32.mrb[1].mxu0 }
 0x267   : > { %v477_v63 = vadd.f32 %v633_v34, %v476_v62 }
 0x268   : > { %516 = vst [vmem:[%s257_s15 + $0x8] sm:$0xff] %v482_v61  ;;  %v705_v0 = vpop.f32.mrb[0].mxu1 }
 0x269   : > { %515 = vst [vmem:[%s257_s15] sm:$0xff] %v477_v63  ;;  %v502_v42 = vadd.f32 %v705_v0, %v633_v34  ;;  %v496_v1 = vpop.f32.mrb[1].mxu1 }
 0x26a   : > { %v497_v2 = vadd.f32 %v633_v34, %v496_v1 }
 0x26b   : > { %520 = vst [vmem:[%s257_s15 + $0x28] sm:$0xff] %v502_v42 }
 0x26c   : > { %519 = vst [vmem:[%s257_s15 + $0x20] sm:$0xff] %v497_v2 }
 0x26d   : > { %v702_v3 = vpop.f32.mrb[2].mxu0 }
 0x26e   : > { %v492_v4 = vadd.f32 %v702_v3, %v633_v34  ;;  %v486_v5 = vpop.f32.mrb[3].mxu0 }
 0x26f   : > { %v487_v6 = vadd.f32 %v633_v34, %v486_v5 }
 0x270   : > { %518 = vst [vmem:[%s257_s15 + $0x18] sm:$0xff] %v492_v4  ;;  %v708_v7 = vpop.f32.mrb[2].mxu1 }
 0x271   : > { %517 = vst [vmem:[%s257_s15 + $0x10] sm:$0xff] %v487_v6  ;;  %v512_v8 = vadd.f32 %v708_v7, %v633_v34  ;;  %v506_v9 = vpop.f32.mrb[3].mxu1 }
 0x272   : > { %v507_v10 = vadd.f32 %v633_v34, %v506_v9 }
 0x273   : > { %522 = vst [vmem:[%s257_s15 + $0x38] sm:$0xff] %v512_v8 }
 0x274   : > { %521 = vst [vmem:[%s257_s15 + $0x30] sm:$0xff] %v507_v10 }
 0x275   : > { %905 = shalt.err (!%p902_p7)
}
 0x276   : > { %s906_s26 = scalar_lea.hbm %s1217_s10, 1024  ;;  %s910_s14 = scalar_lea.hbm %s1266_s5, 2048 }
 0x277   : > { %p907_p9 = scmp.ne.s32.totalorder %s1217_s10, %s906_s26  ;;  %p911_p5 = scmp.lt.u32.totalorder %s1217_s10, %s1266_s5 }
 0x278   : > { %p912_p11 = scmp.lt.u32.totalorder %s910_s14, %s906_s26  ;;  %p914_p4 = scmp.lt.u32.totalorder %s906_s26, %s1217_s10 }
 0x279   : > { %p908_p1 = pnand %p907_p9, %p1095_p12 }
 0x27a   : > { %p913_p2 = por %p912_p11, %p911_p5 }
 0x27b   : > { %p909_p0 = pneg %p908_p1 }
 0x27c   : > { %p915_p6 = por %p914_p4, %p913_p2 }
 0x27e   : > { %p916_p8 = pnand %p915_p6, %p909_p0 }
 0x280   : > { %919 = shalt.err (!%p916_p8)
}
 0x281   : > { %s969_s29 = smov 128   ;;  %s970_s28 = smov 8  }
 0x282   : > { %763 = dma.vmem_to_hbm [thread:$0]  (%p1095_p12), %s1212_s13, 1024, %s1217_s10, %s524_s22, %s969_s29, %s969_s29, %s970_s28  }
 0x283 PF: > { %s552_s27 = sand.u32 1, %s950_s18   ;;  %p1281_p10 = scmp.ne.s32.totalorder %s1271_s25, 0 }
 0x284   : > { %p1282_p13 = scmp.ge.s32.totalorder %s962_s21, 2  ;;  %s553_s11 = scalar_lea.sflag [#allocation4], %s552_s27 }
 0x286   : > { %p774_p3 = pnand %p1282_p13, %p1281_p10 }
 0x288   : > { %945 = dma.done.wait (!%p774_p3), %s553_s11, 1024  }
 0x289   : > { %947 = vsyncadd (!%p774_p3), %s553_s11, 4294966272  ;;  %p19_p7 = scmp.ge.s32.totalorder %s1057_s30, 4   ;;  %s1283_s18 = smov %s954_s19 }
 0x28a   : > { %s1284_s19 = smov %s958_s20  ;;  %s1285_s20 = smov %s1091_s8 }
 0x28b   : > { %s1286_s21 = smov %s1057_s30  ;;  %21 = sbr.rel (!%p19_p7) target bundleno = 6 (0x6), region = 89 }
 0x292   :  { %558 = vsyncpa [#allocation3], 1 }
 0x293   :  { %560 = vsyncpa [#allocation3 + $0x1], 1 }
 0x294   :  { %561 = vsyncpa [#allocation6], 1 }
 0x295   :  { %562 = vsyncpa [#allocation4], 1 }
 0x296   :  { %564 = vsyncpa [#allocation4 + $0x1], 1 }

</bundles_post_ra>
